<compile_context>
chip_gen: v5e
topology: v5e:2x2
jax: 0.10.0
libtpu: 0.0.40
codegen_flags: <defaults>
</compile_context>

<pallas_src>
import numpy as np
import jax
import jax.numpy as jnp
from jax import lax
from jax.experimental import pallas as pl
from jax.experimental.pallas import tpu as pltpu


def _round_up(x, m):
    return (x + m - 1) // m * m


def _sim_tiles(N):
    """Padded token count and (q, k) tile size for the similarity kernel."""
    n8 = _round_up(N, 8)
    if n8 <= 256:
        return n8, n8                       # single tile per batch
    tile = 256                              # VMEM-conservative for v7x (64 MiB)
    return _round_up(N, tile), tile


def _largest_divisor_fold(B, per_batch_bytes, budget_bytes=16 << 20):
    """Largest divisor of B whose folded per-step footprint fits the budget."""
    bb = 1
    for cand in range(1, B + 1):
        if B % cand == 0 and cand * per_batch_bytes <= budget_bytes:
            bb = cand
    return bb


# ----------------------------------------------------------------------------
# Kernel 1: cosine-similarity matrix, tiled over (batch, query-tile, key-tile).
# ----------------------------------------------------------------------------
def cosine_similarity(Xp, *, tile, mxu_dtype=jnp.bfloat16):
    B, Np, Dp = Xp.shape
    nq = Np // tile

    def kernel(xq_ref, xk_ref, sim_ref):
        xq = xq_ref[0]                                      # (tile, Dp) f32
        xk = xk_ref[0]                                      # (tile, Dp) f32
        # F.normalize(p=2, dim=-1): x / max(||x||, 1e-12); rsqrt runs on the EUP.
        qn = xq * lax.rsqrt(jnp.maximum(jnp.sum(xq * xq, -1, keepdims=True), 1e-24))
        kn = xk * lax.rsqrt(jnp.maximum(jnp.sum(xk * xk, -1, keepdims=True), 1e-24))
        # bf16 MXU operands, f32 accumulation.
        sim_ref[0] = lax.dot_general(
            qn.astype(mxu_dtype), kn.astype(mxu_dtype),
            (((1,), (1,)), ((), ())), preferred_element_type=jnp.float32)

    return pl.pallas_call(
        kernel,
        grid=(B, nq, nq),
        in_specs=[pl.BlockSpec((1, tile, Dp), lambda b, q, k: (b, q, 0)),
                  pl.BlockSpec((1, tile, Dp), lambda b, q, k: (b, k, 0))],
        out_specs=pl.BlockSpec((1, tile, tile), lambda b, q, k: (b, q, k)),
        out_shape=jax.ShapeDtypeStruct((B, Np, Np), jnp.float32),
        compiler_params=pltpu.CompilerParams(
            dimension_semantics=("parallel", "parallel", "parallel")),
    )(Xp, Xp)


# ----------------------------------------------------------------------------
# Kernel 2: gumbel-softmax mask + saliency mass + weighted cluster merge.
#   saliency / gumbel / mask are lane-dense (B, 1, Np) rows.
#   merged = (A * mass) @ X / (sum_lanes(A * mass) + 1e-8)
# ----------------------------------------------------------------------------
def gumbel_merge(sal_p, g_p, A, Xp, *, temperature, epsilon,
                 mxu_dtype=jnp.bfloat16):
    B, _, Np = sal_p.shape
    Kp = A.shape[1]
    Dp = Xp.shape[2]

    per_batch_bytes = 4 * (Np * Dp + Kp * Np + Kp * Dp + 3 * Np)
    BB = _largest_divisor_fold(B, per_batch_bytes)          # batch folding
    inv_t = np.float32(1.0 / temperature)
    eps = np.float32(epsilon)

    def kernel(sal_ref, g_ref, a_ref, x_ref, merged_ref, mask_ref):
        sal = sal_ref[...]                                   # (BB, 1, Np)
        logits = (sal + g_ref[...]) * inv_t
        m = jnp.max(logits, axis=-1, keepdims=True)
        e = jnp.exp(logits - m)
        mask = e / jnp.sum(e, axis=-1, keepdims=True)        # (BB, 1, Np)
        mask_ref[...] = mask
        mass = mask * sal + (1.0 - mask) * eps               # (BB, 1, Np)
        # Scale the (one-hot) assignment columns by the mass: one product feeds
        # both the numerator matmul and the denominator lane reduction, and no
        # data has to move off the lane axis.
        am = a_ref[...] * mass                               # (BB, Kp, Np)
        num = jnp.einsum('bkn,bnd->bkd',
                         am.astype(mxu_dtype), x_ref[...].astype(mxu_dtype),
                         preferred_element_type=jnp.float32)  # (BB, Kp, Dp)
        den = jnp.sum(am, axis=-1, keepdims=True)            # (BB, Kp, 1) f32
        merged_ref[...] = num / (den + 1e-8)

    return pl.pallas_call(
        kernel,
        grid=(B // BB,),
        in_specs=[pl.BlockSpec((BB, 1, Np), lambda b: (b, 0, 0)),
                  pl.BlockSpec((BB, 1, Np), lambda b: (b, 0, 0)),
                  pl.BlockSpec((BB, Kp, Np), lambda b: (b, 0, 0)),
                  pl.BlockSpec((BB, Np, Dp), lambda b: (b, 0, 0))],
        out_specs=[pl.BlockSpec((BB, Kp, Dp), lambda b: (b, 0, 0)),
                   pl.BlockSpec((BB, 1, Np), lambda b: (b, 0, 0))],
        out_shape=(jax.ShapeDtypeStruct((B, Kp, Dp), jnp.float32),
                   jax.ShapeDtypeStruct((B, 1, Np), jnp.float32)),
        compiler_params=pltpu.CompilerParams(dimension_semantics=("parallel",)),
    )(sal_p, g_p, A, Xp)


# ----------------------------------------------------------------------------
# Host glue: agglomerative average-linkage clustering (sklearn replacement).
# ----------------------------------------------------------------------------
# TODO(synk): sklearn AgglomerativeClustering has no Pallas equivalent (inherently
# sequential, host-side in the torch reference too); this Lance-Williams
# average-linkage clone matches the algorithm but label numbering may differ.
def agglomerative_average_labels(features, K):
    feats = np.asarray(features, np.float64)
    N = feats.shape[0]
    K = max(1, min(K, N))
    sq = np.sum(feats * feats, axis=-1)
    d = sq[:, None] + sq[None, :] - 2.0 * (feats @ feats.T)
    d = np.sqrt(np.maximum(d, 0.0))
    np.fill_diagonal(d, np.inf)
    size = np.ones(N)
    members = {i: [i] for i in range(N)}
    n_clusters = N
    while n_clusters > K:
        flat = int(np.argmin(d))
        i, j = divmod(flat, N)
        if i > j:
            i, j = j, i
        si, sj = size[i], size[j]
        new_row = (si * d[i] + sj * d[j]) / (si + sj)        # average linkage
        d[i, :] = new_row
        d[:, i] = new_row
        d[i, i] = np.inf
        d[j, :] = np.inf
        d[:, j] = np.inf
        size[i] = si + sj
        members[i].extend(members[j])
        del members[j]
        n_clusters -= 1
    labels = np.zeros(N, np.int32)
    for k, ci in enumerate(sorted(members)):
        labels[members[ci]] = k
    return labels


# ----------------------------------------------------------------------------
# Full forward: DifferentiableTokenMerging.forward(X, saliency, K).
# ----------------------------------------------------------------------------
def differentiable_token_merging(X, saliency, K, key=None, *, temperature=0.1,
                                 epsilon=0.01, gumbel_noise=None,
                                 mxu_dtype=jnp.bfloat16):
    X = jnp.asarray(X, jnp.float32)
    saliency = jnp.asarray(saliency, jnp.float32)
    B, N, D = X.shape
    assert saliency.shape == (B, N)

    # (8,128)-aligned padded sizes (alignment is the prerequisite for MXU wins).
    Dp = _round_up(D, 128)
    Np, tile = _sim_tiles(N)
    Kp = _round_up(K, 8)

    Xp = jnp.pad(X, ((0, 0), (0, Np - N), (0, Dp - D)))      # zero rows/cols

    # Step 1: cosine-similarity matrix (Pallas, tiled).
    sim = cosine_similarity(Xp, tile=tile, mxu_dtype=mxu_dtype)   # (B, Np, Np)

    # Step 2: host-side clustering -> one-hot assignment A (single H2D/D2H sync).
    sim_np = np.asarray(sim)[:, :N, :N]
    A_np = np.zeros((B, Kp, Np), np.float32)
    cols = np.arange(N)
    for b in range(B):
        labels = agglomerative_average_labels(sim_np[b], K)
        A_np[b, labels, cols] = 1.0                           # padded rows/cols stay 0
    A = jnp.asarray(A_np)

    # Step 3: gumbel-softmax mask + saliency-weighted merge (Pallas).
    if gumbel_noise is None:
        if key is None:
            key = jax.random.PRNGKey(0)
        gumbel_noise = jax.random.gumbel(key, (B, N), dtype=jnp.float32)
    gumbel_noise = jnp.asarray(gumbel_noise, jnp.float32)

    # Lane-dense (B, 1, Np) rows; padded lanes get a huge negative saliency so
    # exp() underflows to exactly 0 and they contribute nothing to the softmax,
    # while A's zero columns keep them out of the merge.
    sal_p = jnp.pad(saliency, ((0, 0), (0, Np - N)), constant_values=-1e9)[:, None, :]
    g_p = jnp.pad(gumbel_noise, ((0, 0), (0, Np - N)))[:, None, :]

    merged_p, mask_p = gumbel_merge(sal_p, g_p, A, Xp,
                                    temperature=temperature, epsilon=epsilon,
                                    mxu_dtype=mxu_dtype)
    merged = merged_p[:, :K, :D]
    mask = mask_p[:, 0, :N]
    return merged, mask


if __name__ == "__main__":
    key = jax.random.PRNGKey(0)
    kx, ks, kg = jax.random.split(key, 3)

    B, N, D, K = 2, 16, 32, 4
    temperature, epsilon = 0.1, 0.01

    X = jax.random.normal(kx, (B, N, D), dtype=jnp.float32)
    saliency = jax.random.uniform(ks, (B, N), dtype=jnp.float32)
    gnoise = jax.random.gumbel(kg, (B, N), dtype=jnp.float32)

    merged, mask = differentiable_token_merging(
        X, saliency, K, temperature=temperature, epsilon=epsilon,
        gumbel_noise=gnoise)
    merged, mask = jax.block_until_ready((merged, mask))

    assert merged.shape == (B, K, D)
    assert mask.shape == (B, N)
    assert bool(jnp.all(jnp.isfinite(merged)))
    assert bool(jnp.all(jnp.isfinite(mask)))

    # mask must be the f32 softmax of (saliency + gumbel) / temperature
    mask_ref = jax.nn.softmax((saliency + gnoise) / temperature, axis=-1)
    assert bool(jnp.allclose(mask, mask_ref, atol=1e-4, rtol=1e-4))
    assert bool(jnp.allclose(jnp.sum(mask, axis=-1), 1.0, atol=1e-4))

    print("KERNEL_OK")
</pallas_src>

<mosaic_0001>
module attributes {stable_mosaic.version = 11 : i64} {
  func.func @kernel(%arg0: i32, %arg1: i32, %arg2: i32, %arg3: memref<1x16x128xf32, #tpu.memory_space<vmem>>, %arg4: memref<1x16x128xf32, #tpu.memory_space<vmem>>, %arg5: memref<1x16x16xf32, #tpu.memory_space<vmem>>) attributes {dimension_semantics = [#tpu.dimension_semantics<parallel>, #tpu.dimension_semantics<parallel>, #tpu.dimension_semantics<parallel>], iteration_bounds = array<i64: 2, 1, 1>, scalar_prefetch = 0 : i64, scratch_operands = 0 : i64, tpu.core_type = #tpu.core_type<tc>, window_params = [{transform_indices = @transform_0, window_bounds = array<i64: 1, 16, 128>}, {transform_indices = @transform_1, window_bounds = array<i64: 1, 16, 128>}, {transform_indices = @transform_2, window_bounds = array<i64: 1, 16, 16>}]} {
    %c0 = arith.constant 0 : index
    %c0_0 = arith.constant 0 : index
    %c0_1 = arith.constant 0 : index
    %0 = vector.load %arg3[%c0, %c0_0, %c0_1] : memref<1x16x128xf32, #tpu.memory_space<vmem>>, vector<1x16x128xf32>
    %1 = vector.shape_cast %0 : vector<1x16x128xf32> to vector<16x128xf32>
    %c0_2 = arith.constant 0 : index
    %c0_3 = arith.constant 0 : index
    %c0_4 = arith.constant 0 : index
    %2 = vector.load %arg4[%c0_2, %c0_3, %c0_4] : memref<1x16x128xf32, #tpu.memory_space<vmem>>, vector<1x16x128xf32>
    %3 = vector.shape_cast %2 : vector<1x16x128xf32> to vector<16x128xf32>
    %4 = arith.mulf %1, %1 : vector<16x128xf32>
    %cst = arith.constant dense<0.000000e+00> : vector<16xf32>
    %5 = vector.multi_reduction <add>, %4, %cst [1] : vector<16x128xf32> to vector<16xf32>
    %6 = vector.shape_cast %5 : vector<16xf32> to vector<16x1xf32>
    %cst_5 = arith.constant 1.000000e-24 : f32
    %7 = vector.broadcast %cst_5 : f32 to vector<16x1xf32>
    %8 = arith.maximumf %6, %7 : vector<16x1xf32>
    %9 = math.rsqrt %8 : vector<16x1xf32>
    %10 = vector.broadcast %9 : vector<16x1xf32> to vector<16x128xf32>
    %11 = arith.mulf %1, %10 : vector<16x128xf32>
    %12 = arith.mulf %3, %3 : vector<16x128xf32>
    %cst_6 = arith.constant dense<0.000000e+00> : vector<16xf32>
    %13 = vector.multi_reduction <add>, %12, %cst_6 [1] : vector<16x128xf32> to vector<16xf32>
    %14 = vector.shape_cast %13 : vector<16xf32> to vector<16x1xf32>
    %cst_7 = arith.constant 1.000000e-24 : f32
    %15 = vector.broadcast %cst_7 : f32 to vector<16x1xf32>
    %16 = arith.maximumf %14, %15 : vector<16x1xf32>
    %17 = math.rsqrt %16 : vector<16x1xf32>
    %18 = vector.broadcast %17 : vector<16x1xf32> to vector<16x128xf32>
    %19 = arith.mulf %3, %18 : vector<16x128xf32>
    %20 = arith.truncf %11 : vector<16x128xf32> to vector<16x128xbf16>
    %21 = arith.truncf %19 : vector<16x128xf32> to vector<16x128xbf16>
    %cst_8 = arith.constant dense<0.000000e+00> : vector<16x16xf32>
    %22 = tpu.matmul %20, %21, %cst_8 {dimension_numbers = #tpu.dot_dimension_numbers<[1], [1], [0], [0], [0, 0, 1, 0], [], []>} : vector<16x128xbf16>, vector<16x128xbf16>, vector<16x16xf32> -> vector<16x16xf32>
    %c0_9 = arith.constant 0 : index
    %c0_10 = arith.constant 0 : index
    %c0_11 = arith.constant 0 : index
    %23 = vector.load %arg5[%c0_9, %c0_10, %c0_11] : memref<1x16x16xf32, #tpu.memory_space<vmem>>, vector<1x16x16xf32>
    %24 = vector.shape_cast %23 : vector<1x16x16xf32> to vector<16x16xf32>
    %25 = vector.shape_cast %22 : vector<16x16xf32> to vector<1x16x16xf32>
    tpu.vector_store %arg5[%c0_9, %c0_10, %c0_11], %25 {strides = array<i32>} : memref<1x16x16xf32, #tpu.memory_space<vmem>>, vector<1x16x16xf32>,
    return
  }
  func.func @transform_0(%arg0: i32, %arg1: i32, %arg2: i32) -> (i32, i32, i32) {
    %c0_i32 = arith.constant 0 : i32
    %c0_i32_0 = arith.constant 0 : i32
    return %arg0, %arg1, %c0_i32 : i32, i32, i32
  }
  func.func @transform_1(%arg0: i32, %arg1: i32, %arg2: i32) -> (i32, i32, i32) {
    %c0_i32 = arith.constant 0 : i32
    %c0_i32_0 = arith.constant 0 : i32
    return %arg0, %arg2, %c0_i32 : i32, i32, i32
  }
  func.func @transform_2(%arg0: i32, %arg1: i32, %arg2: i32) -> (i32, i32, i32) {
    %c0_i32 = arith.constant 0 : i32
    return %arg0, %arg1, %arg2 : i32, i32, i32
  }
}

</mosaic_0001>

<bundles_post_ra>
// kernel: tpu_custom_call.1
= control target key start
LH: loop header
LB: loop body
LE: loop exit
PB: predicated region body
PF: predicated region fallthrough
CT: control target
= control target key end

     0   :  { %7 = vsyncpa [#allocation3], 0  ;;  %s879_s0 = inlined_call_operand.hbm [shape: f32[2,16,128], index: 0, kind: input, shape index: {}]   ;;  %s880_s1 = inlined_call_operand.hbm [shape: f32[2,16,128], index: 1, kind: input, shape index: {}]   ;;  %s881_s2 = inlined_call_operand.hbm [shape: f32[2,16,16], index: 2, kind: output, shape index: {}]  }
   0x1   :  { %9 = vsyncpa [#allocation3 + $0x1], 0 }
   0x2   :  { %10 = vsyncpa [#allocation6], 0 }
   0x3   :  { %12 = vsyncpa [#allocation6 + $0x1], 0 }
   0x4   :  { %13 = vsyncpa [#allocation4], 0 }
   0x5   :  { %15 = vsyncpa [#allocation4 + $0x1], 0  ;;  %s728_s9 = smov 0   ;;  %s730_s10 = smov 0  }
   0x6   :  { %s732_s11 = smov 0   ;;  %s734_s12 = smov 0  }
   0x7   :  { %s736_s13 = smov 0   ;;  %s738_s14 = smov 0  }
   0x8 LB: > { %s460_s15 = sadd.s32 4294967295, %s707_s14   ;;  %s461_s16 = sadd.s32 4294967294, %s707_s14   ;;  %s707_s14 = sphi %s738_s14, %s21_s14   ;;  %s703_s13 = sphi %s736_s13, %s891_s13   ;;  %s699_s12 = sphi %s734_s12, %s890_s12   ;;  %s695_s11 = sphi %s732_s11, %s889_s11   ;;  %s691_s10 = sphi %s730_s10, %s888_s10   ;;  %s687_s9 = sphi %s728_s9, %s887_s9  }
   0x9   : > { %s40_s17 = sadd.s32 1, %s703_s13  ;;  %s49_s18 = sadd.s32 1, %s695_s11 }
   0xa   : > { %p42_p0 = scmp.ge.s32.totalorder %s40_s17, 2  ;;  %p56_p1 = scmp.ne.s32.totalorder %s695_s11, %s691_s10 }
   0xb   : > { %p57_p2 = scmp.eq.s32.totalorder %s707_s14, 0  ;;  %p62_p3 = scmp.ne.s32.totalorder %s691_s10, %s687_s9 }
   0xc   : > { %s893_s17 = smov (%p42_p0, %s40_s17), 0  ;;  %p63_p5 = scmp.eq.s32.totalorder %s460_s15, 0 }
   0xd   : > { %p769_p4 = por %p57_p2, %p56_p1  ;;  %s44_s20 = ssub.s32 %s703_s13, %s893_s17 }
   0xe   : > { %p118_p6 = scmp.eq.s32.totalorder %s460_s15, 1  ;;  %p47_p7 = scmp.eq.s32.totalorder %s44_s20, 0 }
   0xf   : > { %p775_p8 = por %p63_p5, %p62_p3  ;;  %p124_p10 = scmp.eq.s32.totalorder %s461_s16, 1 }
  0x10   : > { %p779_p9 = por %p118_p6, %p56_p1  ;;  %p463_p12 = scmp.ge.s32.totalorder %s707_s14, 2 }
  0x11   : > { %s784_s23 = scalar_select %p47_p7, %s695_s11, %s49_s18  }
  0x12   : > { %p786_p11 = por %p124_p10, %p62_p3  ;;  %p499_p13 = scmp.lt.s32.totalorder %s707_s14, 2 }
  0x13   : > { %s793_s25 = sand.u32 1, %s695_s11   ;;  %s479_s27 = sshll.u32 %s703_s13, 4 }
  0x14   : > { %s464_s26 = sshll.u32 %s793_s25, 4  ;;  %s155_s30 = scalar_lea.hbm %s879_s0, %s479_s27 }
  0x15   : > { %s148_s3 = scalar_lea.vmem [#allocation2], %s464_s26  ;;  %s156_s5 = sshll.u32 %s155_s30, 4  ;;  %s157_s5 = int_to_ptr.hbm [resolvable:$true] %s156_s5 }
  0x16   : > { %s158_s4 = sshll.u32 %s148_s3, 4  ;;  %p802_p0 = pnand %p499_p13, %p769_p4  ;;  %s159_s4 = int_to_ptr.vmem [resolvable:$true] %s158_s4 }
  0x17   : > { %p470_p1 = scmp.ge.s32.totalorder %s707_s14, 1  ;;  %s145_s7 = scalar_lea.sflag [#allocation3], %s793_s25 }
  0x18   : > { %s709_s8 = smov 128   ;;  %s710_s15 = smov 8  }
  0x19   : > { %491 = dma.hbm_to_vmem [thread:$0]  (!%p802_p0), %s157_s5, 256, %s159_s4, %s145_s7, %s709_s8, %s709_s8, %s710_s15  }
  0x1a   : > { %p190_p2 = scmp.lt.s32.totalorder %s707_s14, 3  ;;  %s179_s20 = scalar_lea.hbm %s880_s1, %s479_s27 }
  0x1b   : > { %s180_s28 = sshll.u32 %s179_s20, 4  ;;  %s172_s19 = scalar_lea.vmem [#allocation5], %s464_s26  ;;  %s181_s28 = int_to_ptr.hbm [resolvable:$true] %s180_s28 }
  0x1c   : > { %p191_p3 = pnand %p470_p1, %p190_p2  ;;  %s182_s29 = sshll.u32 %s172_s19, 4  ;;  %s183_s29 = int_to_ptr.vmem [resolvable:$true] %s182_s29 }
  0x1d   : > { %s169_s30 = scalar_lea.sflag [#allocation6], %s793_s25  ;;  %s818_s3 = sand.u32 (!%p191_p3), 1, %s691_s10  }
  0x1e   : > { %494 = dma.hbm_to_vmem [thread:$0]  (!%p802_p0), %s181_s28, 256, %s183_s29, %s169_s30, %s709_s8, %s709_s8, %s710_s15  }
  0x1f   : > { %194 = sbr.rel (%p191_p3) target bundleno = 335 (0x14f), region = 28  ;;  %s821_s4 = sshll.u32 (!%p191_p3), %s818_s3, 4 }
  0x20   : > { %s197_s27 = scalar_lea.sflag (!%p191_p3), [#allocation3], %s818_s3  ;;  %s200_s5 = scalar_lea.vmem (!%p191_p3), [#allocation2], %s821_s4 }
  0x24   : > { %674 = dma.done.wait (%p775_p8), %s197_s27, 256  }
  0x25   : > { %676 = vsyncadd (%p775_p8), %s197_s27, 4294967040  ;;  %s207_s25 = scalar_lea.sflag [#allocation6], %s818_s3  ;;  %s210_s26 = scalar_lea.vmem [#allocation5], %s821_s4 }
  0x26   : > { %678 = dma.done.wait (%p775_p8), %s207_s25, 256  }
  0x27   : > { %680 = vsyncadd (%p775_p8), %s207_s25, 4294967040  ;;  %v243_v0 = vld [vmem:[%s210_s26] sm:$0xff]  ;;  %v244_v4 = vld [vmem:[%s210_s26 + $0x8] sm:$0xff]  ;;  %s481_s21 = sshll.u32 %s699_s12, 4  ;;  %vm321_vm12 = vcmask 130048   ;;  %s236_s15 = scalar_lea.vmem [#allocation7], %s821_s4 }
  0x28   : > { %v835_v1 = vld [vmem:[%s200_s5] sm:$0xff]  ;;  %v275_v2 = vmul.f32 %v243_v0, %v243_v0  ;;  %v242_v5 = vld [vmem:[%s200_s5 + $0x8] sm:$0xff]  ;;  %v276_v6 = vmul.f32 %v244_v4, %v244_v4  ;;  %s339_s8 = scalar_lea.hbm %s881_s2, %s481_s21  ;;  %s340_s16 = sshll.u32 %s236_s15, 4  ;;  %s341_s16 = int_to_ptr.vmem [resolvable:$true] %s340_s16 }
  0x29   : > { %v245_v3 = vmul.f32 %v835_v1, %v835_v1  ;;  %v246_v7 = vmul.f32 %v242_v5, %v242_v5  ;;  %s342_s18 = sshll.u32 %s339_s8, 4  ;;  %s325_s20 = scalar_lea.sflag [#allocation4], %s818_s3  ;;  %s343_s18 = int_to_ptr.hbm [resolvable:$true] %s342_s18 }
  0x2a   : > { %277 = vadd.xlane.f32.xlu0 %v275_v2  ;;  %s635_s28 = sshra.s32 %s343_s18, 4  ;;  %s641_s30 = scalar_lea.hbm %s881_s2, 32  ;;  %s636_s28 = int_to_ptr.hbm [resolvable:$true] %s635_s28 }
  0x2b   : > { %247 = vadd.xlane.f32.xlu1 %v245_v3  ;;  %s637_s19 = scalar_lea.hbm %s636_s28, 16  ;;  %p642_p7 = scmp.lt.s32.totalorder %s636_s28, %s881_s2 }
  0x2c   : > { %p638_p4 = scmp.ne.s32.totalorder %s636_s28, %s637_s19  ;;  %p643_p8 = scmp.lt.s32.totalorder %s641_s30, %s637_s19 }
  0x2e   : > { %p639_p5 = pnand %p638_p4, %p779_p9  ;;  %p644_p10 = por %p643_p8, %p642_p7 }
  0x30   : > { %p640_p6 = pneg %p639_p5 }
  0x32   : > { %279 = vadd.xlane.f32.xlu0 %v276_v6  ;;  %p645_p13 = pnand %p644_p10, %p640_p6 }
  0x33   : > { %249 = vadd.xlane.f32.xlu1 %v246_v7 }
  0x9d   : > { %v278_v8 = vpop.xlane.xlu0 %277 }
  0x9e   : > { %v248_v9 = vpop.xlane.xlu1 %247  ;;  %v281_v10 = vmax.f32 %v278_v8, 1e-24 }
  0x9f   : > { %v251_v11 = vmax.f32 %v248_v9, 1e-24 }
  0xa0   : > { %553 = vrsqrt.f32 %v281_v10  ;;  %vm289_vm1 = vweird.f32 %v281_v10 }
  0xa1   : > { %555 = vrsqrt.f32 %v251_v11  ;;  %vm259_vm8 = vweird.f32 %v251_v11 }
  0xa5   : > { %v280_v12 = vpop.xlane.xlu0 %279 }
  0xa6   : > { %v250_v13 = vpop.xlane.xlu1 %249  ;;  %v554_v14 = vpop.eup %553  ;;  %v282_v15 = vmax.f32 %v280_v12, 1e-24 }
  0xa7   : > { %v252_v16 = vmax.f32 %v250_v13, 1e-24  ;;  %v556_v17 = vpop.eup %555  ;;  %v284_v18 = vmul.f32 %v554_v14, %v281_v10  ;;  %vm290_vm0 = vweird.f32 %v554_v14 }
  0xa8   : > { %557 = vrsqrt.f32 %v282_v15  ;;  %v254_v20 = vmul.f32 %v556_v17, %v251_v11  ;;  %vm291_vm3 = vmor %vm289_vm1, %vm290_vm0  ;;  %vm299_vm4 = vweird.f32 %v282_v15  ;;  %vm260_vm9 = vweird.f32 %v556_v17 }
  0xa9   : > { %v285_v19 = vmul.f32 %v554_v14, %v284_v18  ;;  %559 = vrsqrt.f32 %v252_v16  ;;  %vm269_vm5 = vweird.f32 %v252_v16  ;;  %vm261_vm11 = vmor %vm259_vm8, %vm260_vm9 }
  0xaa   : > { %v255_v23 = vmul.f32 %v556_v17, %v254_v20 }
  0xab   : > { %v286_v21 = vmul.f32 0.5, %v285_v19 }
  0xac   : > { %v256_v29 = vmul.f32 0.5, %v255_v23 }
  0xad   : > { %v287_v25 = vsub.f32 1.5, %v286_v21 }
  0xae   : > { %v558_v22 = vpop.eup %557  ;;  %v257_v35 = vsub.f32 1.5, %v256_v29 }
  0xaf   : > { %v560_v24 = vpop.eup %559  ;;  %v294_v26 = vmul.f32 %v558_v22, %v282_v15  ;;  %v288_v32 = vmul.f32 %v554_v14, %v287_v25  ;;  %vm300_vm2 = vweird.f32 %v558_v22 }
  0xb0   : > { %v264_v27 = vmul.f32 %v560_v24, %v252_v16  ;;  %vm270_vm6 = vweird.f32 %v560_v24  ;;  %vm301_vm7 = vmor %vm299_vm4, %vm300_vm2  ;;  %v258_v43 = vmul.f32 %v556_v17, %v257_v35 }
  0xb1   : > { %v295_v28 = vmul.f32 %v558_v22, %v294_v26  ;;  %v292_v37 = vsel %vm291_vm3, %v554_v14, %v288_v32  ;;  %vm271_vm10 = vmor %vm269_vm5, %vm270_vm6 }
  0xb2   : > { %v265_v30 = vmul.f32 %v560_v24, %v264_v27  ;;  %v303_v41 = vmul.f32 %v292_v37, %v243_v0  ;;  %v262_v46 = vsel %vm261_vm11, %v556_v17, %v258_v43 }
  0xb3   : > { %v296_v31 = vmul.f32 0.5, %v295_v28  ;;  %v273_v48 = vmul.f32 %v262_v46, %v835_v1 }
  0xb4   : > { %v266_v33 = vmul.f32 0.5, %v265_v30 }
  0xb5   : > { %v297_v34 = vsub.f32 1.5, %v296_v31 }
  0xb6   : > { %v267_v36 = vsub.f32 1.5, %v266_v33 }
  0xb7   : > { %v298_v38 = vmul.f32 %v558_v22, %v297_v34 }
  0xb8   : > { %v268_v39 = vmul.f32 %v560_v24, %v267_v36 }
  0xb9   : > { %v302_v40 = vsel %vm301_vm7, %v558_v22, %v298_v38 }
  0xba   : > { %v304_v42 = vmul.f32 %v302_v40, %v244_v4  ;;  %v272_v45 = vsel %vm271_vm10, %v560_v24, %v268_v39 }
  0xbb   : > { %v274_v47 = vmul.f32 %v272_v45, %v242_v5 }
  0xbc   : > { %v306_v44 = vpack.c.bf16 %v304_v42, %v303_v41 }
  0xbd   : > { %v305_v49 = vpack.c.bf16 %v274_v47, %v273_v48 }
  0xbe   : > { %314 = vmatpush.bf16.xpose.msra.mxu0 %v306_v44 }
  0xc5   : > { %315 = vmatmul.bf16.vlgmr.msra.gmra.mxu0 %v305_v49 }
 0x142   : > { %v316_v50 = vpop.f32.mrf.mxu0 }
 0x143   : > { %322 = vst.msk [vmem:[%s236_s15] sm:$0xff] %vm321_vm12, %v316_v50 }
 0x14a   : > { %v318_v51 = vpop.f32.mrf.mxu0 }
 0x14b   : > { %323 = vst.msk [vmem:[%s236_s15 + $0x8] sm:$0xff] %vm321_vm12, %v318_v51 }
 0x14c   : > { %648 = shalt.err (!%p645_p13)
}
 0x14d   : > { %s711_s3 = smov 128   ;;  %s712_s5 = smov 8  }
 0x14e   : > { %486 = dma.vmem_to_hbm [thread:$0]  (%p779_p9), %s341_s16, 256, %s343_s18, %s325_s20, %s711_s3, %s711_s3, %s712_s5  }
 0x14f PF: > { %s357_s25 = sand.u32 1, %s687_s9   ;;  %p496_p0 = pnand %p463_p12, %p786_p11 }
 0x150   : > { %s358_s26 = scalar_lea.sflag [#allocation4], %s357_s25 }
 0x151   : > { %p497_p1 = pneg %p496_p0 }
 0x153   : > { %682 = dma.done.wait (%p497_p1), %s358_s26, 256  }
 0x154   : > { %684 = vsyncadd (%p497_p1), %s358_s26, 4294967040  ;;  %s21_s14 = sadd.s32 1, %s707_s14   ;;  %s887_s9 = smov %s691_s10 }
 0x155   : > { %p18_p2 = scmp.ge.s32.totalorder %s21_s14, 4   ;;  %s888_s10 = smov %s695_s11 }
 0x156   : > { %s889_s11 = smov %s784_s23  ;;  %s890_s12 = smov %s703_s13 }
 0x157   : > { %s891_s13 = smov %s893_s17  ;;  %20 = sbr.rel (!%p18_p2) target bundleno = 8 (0x8), region = 86 }
 0x15c   :  { %364 = vsyncpa [#allocation3], 1 }
 0x15d   :  { %366 = vsyncpa [#allocation3 + $0x1], 1 }
 0x15e   :  { %367 = vsyncpa [#allocation6], 1 }
 0x15f   :  { %369 = vsyncpa [#allocation6 + $0x1], 1 }
 0x160   :  { %370 = vsyncpa [#allocation4], 1 }
 0x161   :  { %372 = vsyncpa [#allocation4 + $0x1], 1 }

</bundles_post_ra>
